<compile_context>
chip_gen: v7x
topology: tpu7x:2x2x1
jax: 0.10.0
libtpu: 0.0.40
codegen_flags: <defaults>
</compile_context>

<pallas_src>
import math
import jax
import jax.numpy as jnp
from jax.experimental import pallas as pl
from jax.experimental.pallas import tpu as pltpu


def state_encoder_kernel(x_ref, w1_ref, b1_ref, w2_ref, b2_ref, w3_ref, b3_ref, o_ref):
    # fc1 + ReLU  (cast activations to weight dtype for MXU; accumulate f32)
    h = jnp.dot(x_ref[...].astype(w1_ref.dtype), w1_ref[...],
                preferred_element_type=jnp.float32) + b1_ref[...]
    h = jnp.maximum(h, 0.0)
    # fc2 + ReLU
    h = jnp.dot(h.astype(w2_ref.dtype), w2_ref[...],
                preferred_element_type=jnp.float32) + b2_ref[...]
    h = jnp.maximum(h, 0.0)
    # fc3 + sigmoid
    h = jnp.dot(h.astype(w3_ref.dtype), w3_ref[...],
                preferred_element_type=jnp.float32) + b3_ref[...]
    o_ref[...] = jax.nn.sigmoid(h).astype(o_ref.dtype)


def _round_up(x, m):
    return ((x + m - 1) // m) * m


def state_encoder_forward(obs, params, *, tile_b=256, param_dtype=None,
                          vmem_limit_bytes=64 << 20):
    """obs: [B, in_dim] float32. params: dict (w1,b1,w2,b2,w3,b3);
    w_i: [fan_in, fan_out], b_i: [1, fan_out].
    param_dtype: optionally cast weights (e.g. jnp.bfloat16 on v6e/v7x)."""
    B, in_dim = obs.shape
    mid = params["w1"].shape[1]
    mid2 = params["w2"].shape[1]
    out_dim = params["w3"].shape[1]

    # --- wrapper-side lane padding (layout plumbing only, math unchanged) ---
    in_p = _round_up(in_dim, 128)
    out_p = _round_up(out_dim, 128)

    x = obs.astype(jnp.float32)
    w1, b1 = params["w1"], params["b1"]
    w2, b2 = params["w2"], params["b2"]
    w3, b3 = params["w3"], params["b3"]
    if in_p != in_dim:
        x = jnp.pad(x, ((0, 0), (0, in_p - in_dim)))
        w1 = jnp.pad(w1, ((0, in_p - in_dim), (0, 0)))
    if out_p != out_dim:
        w3 = jnp.pad(w3, ((0, 0), (0, out_p - out_dim)))
        b3 = jnp.pad(b3, ((0, 0), (0, out_p - out_dim)))
    if param_dtype is not None:
        w1 = w1.astype(param_dtype)
        w2 = w2.astype(param_dtype)
        w3 = w3.astype(param_dtype)
    b1 = b1.astype(jnp.float32)
    b2 = b2.astype(jnp.float32)
    b3 = b3.astype(jnp.float32)

    # --- batch tiling: single block for small B, else 256-row (multiple of 8) tiles ---
    if B <= tile_b:
        tb = B                      # whole batch in one block; grid loop removed
    else:
        tb = _round_up(tile_b, 8)   # keep (8,128) alignment on the sublane axis
    grid = (pl.cdiv(B, tb),)

    out_padded = pl.pallas_call(
        state_encoder_kernel,
        out_shape=jax.ShapeDtypeStruct((B, out_p), jnp.float32),
        grid_spec=pltpu.PrefetchScalarGridSpec(
            num_scalar_prefetch=0,
            grid=grid,
            in_specs=[
                pl.BlockSpec((tb, in_p), lambda i: (i, 0)),      # obs tile
                pl.BlockSpec((in_p, mid), lambda i: (0, 0)),     # w1 (VMEM-resident)
                pl.BlockSpec((1, mid), lambda i: (0, 0)),        # b1
                pl.BlockSpec((mid, mid2), lambda i: (0, 0)),     # w2
                pl.BlockSpec((1, mid2), lambda i: (0, 0)),       # b2
                pl.BlockSpec((mid2, out_p), lambda i: (0, 0)),   # w3
                pl.BlockSpec((1, out_p), lambda i: (0, 0)),      # b3
            ],
            out_specs=pl.BlockSpec((tb, out_p), lambda i: (i, 0)),
        ),
        compiler_params=pltpu.CompilerParams(
            dimension_semantics=("parallel",),   # batch axis shards across TCs on v7x
            vmem_limit_bytes=vmem_limit_bytes,
        ),
    )(x, w1, b1, w2, b2, w3, b3)

    # TODO(synk): if mid/mid2 grow to 2048-4096 on v7x, add a K-tiled grid axis with an
    # f32 accumulator scratch for fc2 instead of keeping w2 fully VMEM-resident.
    return out_padded[:, :out_dim] if out_p != out_dim else out_padded


def init_params(key, in_dim, out_dim, mid=256, mid2=256):
    """Deterministic init mirroring nn.Linear's default (uniform +/- 1/sqrt(fan_in)).
    Weights stored as [fan_in, fan_out] (already transposed for x @ W)."""
    keys = jax.random.split(key, 6)

    def linear(kw, kb, fan_in, fan_out):
        bound = 1.0 / math.sqrt(fan_in)
        w = jax.random.uniform(kw, (fan_in, fan_out), jnp.float32, -bound, bound)
        b = jax.random.uniform(kb, (1, fan_out), jnp.float32, -bound, bound)
        return w, b

    w1, b1 = linear(keys[0], keys[1], in_dim, mid)
    w2, b2 = linear(keys[2], keys[3], mid, mid2)
    w3, b3 = linear(keys[4], keys[5], mid2, out_dim)
    return {"w1": w1, "b1": b1, "w2": w2, "b2": b2, "w3": w3, "b3": b3}


def reference_forward(obs, p):
    h = jnp.maximum(obs @ p["w1"] + p["b1"], 0.0)
    h = jnp.maximum(h @ p["w2"] + p["b2"], 0.0)
    h = h @ p["w3"] + p["b3"]
    return jax.nn.sigmoid(h)


if __name__ == "__main__":
    key = jax.random.PRNGKey(0)
    k_obs, k_par = jax.random.split(key)

    B, in_dim, out_dim = 8, 32, 32   # small shapes; mid=mid2=256 as in the module default
    obs = jax.random.normal(k_obs, (B, in_dim), jnp.float32)
    params = init_params(k_par, in_dim, out_dim, mid=256, mid2=256)

    out = state_encoder_forward(obs, params)      # f32 weights -> exact vs reference
    out = jax.block_until_ready(out)

    ref = reference_forward(obs, params)
    assert out.shape == (B, out_dim)
    assert jnp.allclose(out, ref, atol=1e-5, rtol=1e-5), "mismatch vs pure-JAX reference"

    # bf16-weight path (v6e/v7x fast path) should still be close in f32 accumulation.
    out_bf16 = jax.block_until_ready(
        state_encoder_forward(obs, params, param_dtype=jnp.bfloat16))
    assert jnp.allclose(out_bf16, ref, atol=2e-2, rtol=2e-2), "bf16 path diverged"

    print("KERNEL_OK")
</pallas_src>

<mosaic_0001>
module attributes {stable_mosaic.version = 11 : i64} {
  func.func @state_encoder_kernel(%arg0: i32, %arg1: memref<8x128xf32, #tpu.memory_space<vmem>>, %arg2: memref<128x256xf32, #tpu.memory_space<vmem>>, %arg3: memref<1x256xf32, #tpu.memory_space<vmem>>, %arg4: memref<256x256xf32, #tpu.memory_space<vmem>>, %arg5: memref<1x256xf32, #tpu.memory_space<vmem>>, %arg6: memref<256x128xf32, #tpu.memory_space<vmem>>, %arg7: memref<1x128xf32, #tpu.memory_space<vmem>>, %arg8: memref<8x128xf32, #tpu.memory_space<vmem>>) attributes {dimension_semantics = [#tpu.dimension_semantics<parallel>], iteration_bounds = array<i64: 1>, scalar_prefetch = 0 : i64, scratch_operands = 0 : i64, tpu.core_type = #tpu.core_type<tc>, window_params = [{transform_indices = @transform_0, window_bounds = array<i64: 8, 128>}, {pipeline_mode = #tpu.pipeline_mode<synchronous>, transform_indices = @transform_1, window_bounds = array<i64: 128, 256>}, {pipeline_mode = #tpu.pipeline_mode<synchronous>, transform_indices = @transform_2, window_bounds = array<i64: 1, 256>}, {pipeline_mode = #tpu.pipeline_mode<synchronous>, transform_indices = @transform_3, window_bounds = array<i64: 256, 256>}, {pipeline_mode = #tpu.pipeline_mode<synchronous>, transform_indices = @transform_4, window_bounds = array<i64: 1, 256>}, {pipeline_mode = #tpu.pipeline_mode<synchronous>, transform_indices = @transform_5, window_bounds = array<i64: 256, 128>}, {pipeline_mode = #tpu.pipeline_mode<synchronous>, transform_indices = @transform_6, window_bounds = array<i64: 1, 128>}, {transform_indices = @transform_7, window_bounds = array<i64: 8, 128>}]} {
    %c0 = arith.constant 0 : index
    %c0_0 = arith.constant 0 : index
    %0 = vector.load %arg1[%c0, %c0_0] : memref<8x128xf32, #tpu.memory_space<vmem>>, vector<8x128xf32>
    %c0_1 = arith.constant 0 : index
    %c0_2 = arith.constant 0 : index
    %1 = vector.load %arg2[%c0_1, %c0_2] : memref<128x256xf32, #tpu.memory_space<vmem>>, vector<128x256xf32>
    %cst = arith.constant dense<0.000000e+00> : vector<8x256xf32>
    %2 = tpu.matmul %0, %1, %cst {dimension_numbers = #tpu.dot_dimension_numbers<[1], [0], [0], [1], [0, 0, 1, 1], [], []>} : vector<8x128xf32>, vector<128x256xf32>, vector<8x256xf32> -> vector<8x256xf32>
    %c0_3 = arith.constant 0 : index
    %c0_4 = arith.constant 0 : index
    %3 = vector.load %arg3[%c0_3, %c0_4] : memref<1x256xf32, #tpu.memory_space<vmem>>, vector<1x256xf32>
    %4 = vector.broadcast %3 : vector<1x256xf32> to vector<8x256xf32>
    %5 = arith.addf %2, %4 : vector<8x256xf32>
    %cst_5 = arith.constant 0.000000e+00 : f32
    %6 = vector.broadcast %cst_5 : f32 to vector<8x256xf32>
    %7 = arith.maximumf %5, %6 : vector<8x256xf32>
    %c0_6 = arith.constant 0 : index
    %c0_7 = arith.constant 0 : index
    %8 = vector.load %arg4[%c0_6, %c0_7] : memref<256x256xf32, #tpu.memory_space<vmem>>, vector<256x256xf32>
    %cst_8 = arith.constant dense<0.000000e+00> : vector<8x256xf32>
    %9 = tpu.matmul %7, %8, %cst_8 {dimension_numbers = #tpu.dot_dimension_numbers<[1], [0], [0], [1], [0, 0, 1, 1], [], []>} : vector<8x256xf32>, vector<256x256xf32>, vector<8x256xf32> -> vector<8x256xf32>
    %c0_9 = arith.constant 0 : index
    %c0_10 = arith.constant 0 : index
    %10 = vector.load %arg5[%c0_9, %c0_10] : memref<1x256xf32, #tpu.memory_space<vmem>>, vector<1x256xf32>
    %11 = vector.broadcast %10 : vector<1x256xf32> to vector<8x256xf32>
    %12 = arith.addf %9, %11 : vector<8x256xf32>
    %cst_11 = arith.constant 0.000000e+00 : f32
    %13 = vector.broadcast %cst_11 : f32 to vector<8x256xf32>
    %14 = arith.maximumf %12, %13 : vector<8x256xf32>
    %c0_12 = arith.constant 0 : index
    %c0_13 = arith.constant 0 : index
    %15 = vector.load %arg6[%c0_12, %c0_13] : memref<256x128xf32, #tpu.memory_space<vmem>>, vector<256x128xf32>
    %cst_14 = arith.constant dense<0.000000e+00> : vector<8x128xf32>
    %16 = tpu.matmul %14, %15, %cst_14 {dimension_numbers = #tpu.dot_dimension_numbers<[1], [0], [0], [1], [0, 0, 1, 1], [], []>} : vector<8x256xf32>, vector<256x128xf32>, vector<8x128xf32> -> vector<8x128xf32>
    %c0_15 = arith.constant 0 : index
    %c0_16 = arith.constant 0 : index
    %17 = vector.load %arg7[%c0_15, %c0_16] : memref<1x128xf32, #tpu.memory_space<vmem>>, vector<1x128xf32>
    %18 = vector.broadcast %17 : vector<1x128xf32> to vector<8x128xf32>
    %19 = arith.addf %16, %18 : vector<8x128xf32>
    %20 = arith.negf %19 : vector<8x128xf32>
    %21 = math.exp %20 : vector<8x128xf32>
    %cst_17 = arith.constant 1.000000e+00 : f32
    %22 = vector.broadcast %cst_17 : f32 to vector<8x128xf32>
    %23 = arith.addf %22, %21 : vector<8x128xf32>
    %24 = arith.divf %22, %23 : vector<8x128xf32>
    %c0_18 = arith.constant 0 : index
    %c0_19 = arith.constant 0 : index
    %25 = vector.load %arg8[%c0_18, %c0_19] : memref<8x128xf32, #tpu.memory_space<vmem>>, vector<8x128xf32>
    tpu.vector_store %arg8[%c0_18, %c0_19], %24 {strides = array<i32>} : memref<8x128xf32, #tpu.memory_space<vmem>>, vector<8x128xf32>,
    return
  }
  func.func @transform_0(%arg0: i32) -> (i32, i32) {
    %c0_i32 = arith.constant 0 : i32
    %c0_i32_0 = arith.constant 0 : i32
    return %arg0, %c0_i32 : i32, i32
  }
  func.func @transform_1(%arg0: i32) -> (i32, i32) {
    %c0_i32 = arith.constant 0 : i32
    %c0_i32_0 = arith.constant 0 : i32
    %c0_i32_1 = arith.constant 0 : i32
    return %c0_i32, %c0_i32_0 : i32, i32
  }
  func.func @transform_2(%arg0: i32) -> (i32, i32) {
    %c0_i32 = arith.constant 0 : i32
    %c0_i32_0 = arith.constant 0 : i32
    %c0_i32_1 = arith.constant 0 : i32
    return %c0_i32, %c0_i32_0 : i32, i32
  }
  func.func @transform_3(%arg0: i32) -> (i32, i32) {
    %c0_i32 = arith.constant 0 : i32
    %c0_i32_0 = arith.constant 0 : i32
    %c0_i32_1 = arith.constant 0 : i32
    return %c0_i32, %c0_i32_0 : i32, i32
  }
  func.func @transform_4(%arg0: i32) -> (i32, i32) {
    %c0_i32 = arith.constant 0 : i32
    %c0_i32_0 = arith.constant 0 : i32
    %c0_i32_1 = arith.constant 0 : i32
    return %c0_i32, %c0_i32_0 : i32, i32
  }
  func.func @transform_5(%arg0: i32) -> (i32, i32) {
    %c0_i32 = arith.constant 0 : i32
    %c0_i32_0 = arith.constant 0 : i32
    %c0_i32_1 = arith.constant 0 : i32
    return %c0_i32, %c0_i32_0 : i32, i32
  }
  func.func @transform_6(%arg0: i32) -> (i32, i32) {
    %c0_i32 = arith.constant 0 : i32
    %c0_i32_0 = arith.constant 0 : i32
    %c0_i32_1 = arith.constant 0 : i32
    return %c0_i32, %c0_i32_0 : i32, i32
  }
  func.func @transform_7(%arg0: i32) -> (i32, i32) {
    %c0_i32 = arith.constant 0 : i32
    %c0_i32_0 = arith.constant 0 : i32
    return %arg0, %c0_i32 : i32, i32
  }
}

</mosaic_0001>

<bundles_post_ra>
// kernel: tpu_custom_call.1
= control target key start
LH: loop header
LB: loop body
LE: loop exit
PB: predicated region body
PF: predicated region fallthrough
CT: control target
= control target key end

     0   :  { %12 = vsyncpa [#allocation3], 0  ;;  %s1032_s0 = inlined_call_operand.hbm [shape: f32[8,128], index: 0, kind: input, shape index: {}]   ;;  %s1033_s1 = inlined_call_operand.hbm [shape: f32[128,256], index: 1, kind: input, shape index: {}]   ;;  %s1034_s2 = inlined_call_operand.hbm [shape: f32[1,256], index: 2, kind: input, shape index: {}]   ;;  %s1035_s3 = inlined_call_operand.hbm [shape: f32[256,256], index: 3, kind: input, shape index: {}]   ;;  %s1036_s4 = inlined_call_operand.hbm [shape: f32[1,256], index: 4, kind: input, shape index: {}]   ;;  %s1037_s5 = inlined_call_operand.hbm [shape: f32[256,128], index: 5, kind: input, shape index: {}]   ;;  %s1038_s6 = inlined_call_operand.hbm [shape: f32[1,128], index: 6, kind: input, shape index: {}]   ;;  %s1039_s7 = inlined_call_operand.hbm [shape: f32[8,128], index: 7, kind: output, shape index: {}]  }
   0x1   :  { %13 = vsyncpa [#allocation6], 0 }
   0x2   :  { %14 = vsyncpa [#allocation9], 0 }
   0x3   :  { %15 = vsyncpa [#allocation12], 0 }
   0x4   :  { %16 = vsyncpa [#allocation4], 0  ;;  %s883_s24 = smov [#allocation5]   ;;  %s697_s28 = scalar_lea.hbm %s1033_s1, 4096 }
   0x5   :  { %s32_s25 = sshll.u32 %s883_s24, 4  ;;  %p698_p0 = scmp.ne.s32.totalorder %s1033_s1, %s697_s28  ;;  %s33_s25 = int_to_ptr.vmem [resolvable:$true] %s32_s25 }
   0x6   :  { %p701_p1 = scmp.lt.u32.totalorder %s697_s28, %s1033_s1 }
   0x8   :  { %p703_p2 = pnand %p701_p1, %p698_p0 }
   0xa   :  { %706 = shalt.err (!%p703_p2)
}
   0xb   :  { %s707_s10 = scalar_lea.vmem %s33_s25, 4096  ;;  %p712_p4 = scmp.lt.s32.totalorder %s33_s25, %s33_s25 }
   0xc   :  { %p708_p3 = scmp.ne.s32.totalorder %s33_s25, %s707_s10  ;;  %p713_p5 = scmp.lt.s32.totalorder %s707_s10, %s707_s10 }
   0xe   :  { %p714_p6 = por %p713_p5, %p712_p4 }
  0x10   :  { %p715_p7 = pnand %p714_p6, %p708_p3 }
  0x12   :  { %718 = shalt.err (!%p715_p7)
}
  0x13   :  { %s884_s11 = smov 256   ;;  %s885_s12 = smov 16  }
  0x14   :  { %38 = dma.hbm_to_vmem [thread:$0]  %s1033_s1, 4096, %s33_s25, [#allocation6], %s884_s11, %s884_s11, %s885_s12  }
  0x15   :  { %s886_s15 = smov [#allocation8]   ;;  %s887_s17 = smov [#allocation11]  }
  0x16   :  { %s54_s16 = sshll.u32 %s886_s15, 4  ;;  %s76_s18 = sshll.u32 %s887_s17, 4  ;;  %s55_s16 = int_to_ptr.vmem [resolvable:$true] %s54_s16  ;;  %s77_s18 = int_to_ptr.vmem [resolvable:$true] %s76_s18 }
  0x17   :  { %s719_s21 = scalar_lea.hbm %s1035_s3, 8192 }
  0x18   :  { %p720_p8 = scmp.ne.s32.totalorder %s1035_s3, %s719_s21  ;;  %p723_p9 = scmp.lt.u32.totalorder %s719_s21, %s1035_s3 }
  0x1a   :  { %p725_p10 = pnand %p723_p9, %p720_p8 }
  0x1c   :  { %728 = shalt.err (!%p725_p10)
}
  0x1d   :  { %s729_s1 = scalar_lea.vmem %s55_s16, 8192  ;;  %p734_p12 = scmp.lt.s32.totalorder %s55_s16, %s55_s16 }
  0x1e   :  { %p730_p11 = scmp.ne.s32.totalorder %s55_s16, %s729_s1  ;;  %p735_p13 = scmp.lt.s32.totalorder %s729_s1, %s729_s1 }
  0x20   :  { %p736_p0 = por %p735_p13, %p734_p12 }
  0x22   :  { %p737_p1 = pnand %p736_p0, %p730_p11 }
  0x24   :  { %740 = shalt.err (!%p737_p1)
}
  0x25   :  { %60 = dma.hbm_to_vmem [thread:$0]  %s1035_s3, 8192, %s55_s16, [#allocation9], %s884_s11, %s884_s11, %s885_s12  }
  0x26   :  { %s741_s30 = scalar_lea.hbm %s1037_s5, 4096 }
  0x27   :  { %p742_p2 = scmp.ne.s32.totalorder %s1037_s5, %s741_s30  ;;  %p745_p3 = scmp.lt.u32.totalorder %s741_s30, %s1037_s5 }
  0x29   :  { %p747_p4 = pnand %p745_p3, %p742_p2 }
  0x2b   :  { %750 = shalt.err (!%p747_p4)
}
  0x2c   :  { %s751_s14 = scalar_lea.vmem %s77_s18, 4096  ;;  %p756_p6 = scmp.lt.s32.totalorder %s77_s18, %s77_s18 }
  0x2d   :  { %p752_p5 = scmp.ne.s32.totalorder %s77_s18, %s751_s14  ;;  %p757_p7 = scmp.lt.s32.totalorder %s751_s14, %s751_s14 }
  0x2f   :  { %p758_p8 = por %p757_p7, %p756_p6 }
  0x31   :  { %p759_p9 = pnand %p758_p8, %p752_p5 }
  0x33   :  { %762 = shalt.err (!%p759_p9)
}
  0x34   :  { %s888_s3 = smov 128   ;;  %s889_s11 = smov 8  }
  0x35   :  { %82 = dma.hbm_to_vmem [thread:$0]  %s1037_s5, 4096, %s77_s18, [#allocation12], %s888_s3, %s888_s3, %s889_s11  }
  0x36   :  { %s890_s16 = smov [#allocation2]   ;;  %s891_s19 = smov [#allocation7]  }
  0x37   :  { %s23_s17 = sshll.u32 %s890_s16, 4  ;;  %s45_s20 = sshll.u32 %s891_s19, 4  ;;  %s24_s17 = int_to_ptr.vmem [resolvable:$true] %s23_s17  ;;  %s46_s20 = int_to_ptr.vmem [resolvable:$true] %s45_s20 }
  0x38   :  { %s763_s23 = scalar_lea.hbm %s1032_s0, 128 }
  0x39   :  { %p764_p10 = scmp.ne.s32.totalorder %s1032_s0, %s763_s23  ;;  %p767_p11 = scmp.lt.u32.totalorder %s763_s23, %s1032_s0 }
  0x3b   :  { %p769_p12 = pnand %p767_p11, %p764_p10 }
  0x3d   :  { %772 = shalt.err (!%p769_p12)
}
  0x3e   :  { %s773_s5 = scalar_lea.vmem %s24_s17, 128  ;;  %p778_p0 = scmp.lt.s32.totalorder %s24_s17, %s24_s17 }
  0x3f   :  { %p774_p13 = scmp.ne.s32.totalorder %s24_s17, %s773_s5  ;;  %p779_p1 = scmp.lt.s32.totalorder %s773_s5, %s773_s5 }
  0x41   :  { %p780_p2 = por %p779_p1, %p778_p0 }
  0x43   :  { %p781_p3 = pnand %p780_p2, %p774_p13 }
  0x45   :  { %784 = shalt.err (!%p781_p3)
}
  0x46   :  { %26 = dma.hbm_to_vmem [thread:$0]  %s1032_s0, 128, %s24_s17, [#allocation3]  }
  0x47   :  { %s785_s30 = scalar_lea.hbm %s1034_s2, 32 }
  0x48   :  { %p786_p4 = scmp.ne.s32.totalorder %s1034_s2, %s785_s30  ;;  %p789_p5 = scmp.lt.u32.totalorder %s785_s30, %s1034_s2 }
  0x4a   :  { %p791_p6 = pnand %p789_p5, %p786_p4 }
  0x4c   :  { %794 = shalt.err (!%p791_p6)
}
  0x4d   :  { %s795_s14 = scalar_lea.vmem %s46_s20, 32  ;;  %p800_p8 = scmp.lt.s32.totalorder %s46_s20, %s46_s20 }
  0x4e   :  { %p796_p7 = scmp.ne.s32.totalorder %s46_s20, %s795_s14  ;;  %p801_p9 = scmp.lt.s32.totalorder %s795_s14, %s795_s14 }
  0x50   :  { %p802_p10 = por %p801_p9, %p800_p8 }
  0x52   :  { %p803_p11 = pnand %p802_p10, %p796_p7 }
  0x54   :  { %806 = shalt.err (!%p803_p11)
}
  0x55   :  { %48 = dma.hbm_to_vmem [thread:$0]  %s1034_s2, 32, %s46_s20, [#allocation6]  }
  0x56   :  { %s892_s11 = smov [#allocation10]   ;;  %s893_s15 = smov [#allocation13]  }
  0x57   :  { %s67_s12 = sshll.u32 %s892_s11, 4  ;;  %s89_s16 = sshll.u32 %s893_s15, 4  ;;  %s68_s12 = int_to_ptr.vmem [resolvable:$true] %s67_s12  ;;  %s90_s16 = int_to_ptr.vmem [resolvable:$true] %s89_s16 }
  0x58   :  { %s807_s21 = scalar_lea.hbm %s1036_s4, 32 }
  0x59   :  { %p808_p12 = scmp.ne.s32.totalorder %s1036_s4, %s807_s21  ;;  %p811_p13 = scmp.lt.u32.totalorder %s807_s21, %s1036_s4 }
  0x5b   :  { %p813_p0 = pnand %p811_p13, %p808_p12 }
  0x5d   :  { %816 = shalt.err (!%p813_p0)
}
  0x5e   :  { %s817_s2 = scalar_lea.vmem %s68_s12, 32  ;;  %p822_p2 = scmp.lt.s32.totalorder %s68_s12, %s68_s12 }
  0x5f   :  { %p818_p1 = scmp.ne.s32.totalorder %s68_s12, %s817_s2  ;;  %p823_p3 = scmp.lt.s32.totalorder %s817_s2, %s817_s2 }
  0x61   :  { %p824_p4 = por %p823_p3, %p822_p2 }
  0x63   :  { %p825_p5 = pnand %p824_p4, %p818_p1 }
  0x65   :  { %828 = shalt.err (!%p825_p5)
}
  0x66   :  { %70 = dma.hbm_to_vmem [thread:$0]  %s1036_s4, 32, %s68_s12, [#allocation9]  }
  0x67   :  { %s829_s18 = scalar_lea.hbm %s1038_s6, 16 }
  0x68   :  { %p830_p6 = scmp.ne.s32.totalorder %s1038_s6, %s829_s18  ;;  %p833_p7 = scmp.lt.u32.totalorder %s829_s18, %s1038_s6 }
  0x6a   :  { %p835_p8 = pnand %p833_p7, %p830_p6 }
  0x6c   :  { %838 = shalt.err (!%p835_p8)
}
  0x6d   :  { %s839_s8 = scalar_lea.vmem %s90_s16, 16  ;;  %s843_s9 = scalar_lea.vmem %s90_s16, 32 }
  0x6e   :  { %p840_p9 = scmp.ne.s32.totalorder %s90_s16, %s839_s8  ;;  %p844_p10 = scmp.lt.s32.totalorder %s90_s16, %s90_s16 }
  0x6f   :  { %p845_p11 = scmp.lt.s32.totalorder %s843_s9, %s839_s8 }
  0x71   :  { %p846_p12 = por %p845_p11, %p844_p10 }
  0x73   :  { %p847_p13 = pnand %p846_p12, %p840_p9 }
  0x75   :  { %850 = shalt.err (!%p847_p13)
}
  0x76   :  { %92 = dma.hbm_to_vmem [thread:$0]  %s1038_s6, 16, %s90_s16, [#allocation12]  }
  0x77   :  { %873 = dma.done.wait [#allocation3], 128  }
  0x78   :  { %874 = vsyncadd [#allocation3], 4294967168 }
  0x79   :  { %875 = dma.done.wait [#allocation6], 4128  }
  0x7a   :  { %876 = vsyncadd [#allocation6], 4294963168 }
  0x7b   :  { %877 = dma.done.wait [#allocation9], 8224  }
  0x7c   :  { %878 = vsyncadd [#allocation9], 4294959072 }
  0x7d   :  { %879 = dma.done.wait [#allocation12], 4112  }
  0x7e   :  { %880 = vsyncadd [#allocation12], 4294963184  ;;  %v894_v0 = vmov 0.0   ;;  %v116_v1 = vld [vmem:[#allocation5 + $0x8] sm:$0xff]  ;;  %v118_v2 = vld [vmem:[#allocation5 + $0x18] sm:$0xff]  ;;  %s895_s6 = smov [#allocation14]  }
  0x7f   :  { %223 = vmatprep.mubr.f32.mxu0 %v894_v0  ;;  %v115_v3 = vld [vmem:[#allocation5] sm:$0xff]  ;;  %v552_v4 = vpack.c.bf16 %v118_v2, %v116_v1  ;;  %v117_v5 = vld [vmem:[#allocation5 + $0x10] sm:$0xff]  ;;  %v120_v6 = vld [vmem:[#allocation5 + $0x28] sm:$0xff]  ;;  %s503_s13 = sshll.u32 %s895_s6, 4  ;;  %s504_s13 = int_to_ptr.vmem [resolvable:$true] %s503_s13 }
  0x80   :  { %v122_v7 = vld [vmem:[#allocation5 + $0x38] sm:$0xff]  ;;  %v554_v8 = vpack.c.bf16 %v117_v5, %v115_v3  ;;  %v119_v10 = vld [vmem:[#allocation5 + $0x20] sm:$0xff]  ;;  %v121_v11 = vld [vmem:[#allocation5 + $0x30] sm:$0xff]  ;;  %s851_s14 = scalar_lea.vmem %s504_s13, 128  ;;  %p856_p1 = scmp.lt.s32.totalorder %s504_s13, %s504_s13 }
  0x81   :  { %v556_v9 = vpack.c.bf16 %v122_v7, %v120_v6  ;;  %v124_v12 = vld [vmem:[#allocation5 + $0x48] sm:$0xff]  ;;  %553 = vmatprep.subr.bf16.mxu0 %v552_v4  ;;  %v126_v13 = vld [vmem:[#allocation5 + $0x58] sm:$0xff]  ;;  %v558_v14 = vpack.c.bf16 %v121_v11, %v119_v10  ;;  %v123_v16 = vld [vmem:[#allocation5 + $0x40] sm:$0xff]  ;;  %p852_p0 = scmp.ne.s32.totalorder %s504_s13, %s851_s14  ;;  %p857_p2 = scmp.lt.s32.totalorder %s851_s14, %s851_s14 }
  0x82   :  { %555 = vmatpush1.bf16.msra.mxu0 %v554_v8  ;;  %v560_v15 = vpack.c.bf16 %v126_v13, %v124_v12  ;;  %v125_v17 = vld [vmem:[#allocation5 + $0x50] sm:$0xff]  ;;  %v128_v18 = vld [vmem:[#allocation5 + $0x68] sm:$0xff]  ;;  %v130_v19 = vld [vmem:[#allocation5 + $0x78] sm:$0xff] }
  0x83   :  { %557 = vmatprep.subr.bf16.mxu0 %v556_v9  ;;  %v562_v20 = vpack.c.bf16 %v125_v17, %v123_v16  ;;  %v564_v21 = vpack.c.bf16 %v130_v19, %v128_v18  ;;  %v127_v22 = vld [vmem:[#allocation5 + $0x60] sm:$0xff]  ;;  %v129_v23 = vld [vmem:[#allocation5 + $0x70] sm:$0xff]  ;;  %v132_v24 = vld [vmem:[#allocation5 + $0x88] sm:$0xff]  ;;  %p858_p3 = por %p857_p2, %p856_p1 }
  0x84   :  { %v134_v25 = vld [vmem:[#allocation5 + $0x98] sm:$0xff]  ;;  %v131_v26 = vld [vmem:[#allocation5 + $0x80] sm:$0xff]  ;;  %v133_v27 = vld [vmem:[#allocation5 + $0x90] sm:$0xff]  ;;  %v566_v31 = vpack.c.bf16 %v129_v23, %v127_v22 }
  0x85   :  { %v233_v28 = vld [vmem:[#allocation8 + $0x8] sm:$0xff]  ;;  %v235_v29 = vld [vmem:[#allocation8 + $0x18] sm:$0xff]  ;;  %v232_v30 = vld [vmem:[#allocation8] sm:$0xff]  ;;  %v568_v36 = vpack.c.bf16 %v134_v25, %v132_v24  ;;  %v570_v46 = vpack.c.bf16 %v133_v27, %v131_v26  ;;  %p859_p4 = pnand %p858_p3, %p852_p0 }
  0x86   :  { %559 = vmatpush1.bf16.msra.mxu0 %v558_v14  ;;  %v584_v32 = vpack.c.bf16 %v235_v29, %v233_v28  ;;  %v234_v33 = vld [vmem:[#allocation8 + $0x10] sm:$0xff]  ;;  %v237_v34 = vld [vmem:[#allocation8 + $0x28] sm:$0xff]  ;;  %v239_v35 = vld [vmem:[#allocation8 + $0x38] sm:$0xff] }
  0x87   :  { %561 = vmatprep.subr.bf16.mxu0 %v560_v15  ;;  %v586_v37 = vpack.c.bf16 %v234_v33, %v232_v30  ;;  %v588_v38 = vpack.c.bf16 %v239_v35, %v237_v34  ;;  %v236_v39 = vld [vmem:[#allocation8 + $0x20] sm:$0xff]  ;;  %v238_v40 = vld [vmem:[#allocation8 + $0x30] sm:$0xff]  ;;  %v241_v41 = vld [vmem:[#allocation8 + $0x48] sm:$0xff] }
  0x88   :  { %v136_v42 = vld [vmem:[#allocation5 + $0xa8] sm:$0xff]  ;;  %v138_v43 = vld [vmem:[#allocation5 + $0xb8] sm:$0xff]  ;;  %585 = vmatprep.subr.bf16.mxu1 %v584_v32  ;;  %v590_v45 = vpack.c.bf16 %v238_v40, %v236_v39  ;;  %v135_v47 = vld [vmem:[#allocation5 + $0xa0] sm:$0xff] }
  0x89   :  { %v243_v44 = vld [vmem:[#allocation8 + $0x58] sm:$0xff]  ;;  %587 = vmatpush1.bf16.msra.mxu1 %v586_v37  ;;  %v240_v49 = vld [vmem:[#allocation8 + $0x40] sm:$0xff]  ;;  %v242_v50 = vld [vmem:[#allocation8 + $0x50] sm:$0xff]  ;;  %v572_v51 = vpack.c.bf16 %v138_v43, %v136_v42 }
  0x8a   :  { %563 = vmatpush1.bf16.msra.mxu0 %v562_v20  ;;  %589 = vmatprep.subr.bf16.mxu1 %v588_v38  ;;  %v592_v48 = vpack.c.bf16 %v243_v44, %v241_v41  ;;  %v137_v52 = vld [vmem:[#allocation5 + $0xb0] sm:$0xff]  ;;  %v247_v54 = vld [vmem:[#allocation8 + $0x78] sm:$0xff]  ;;  %v140_v55 = vld [vmem:[#allocation5 + $0xc8] sm:$0xff]  ;;  %v594_v57 = vpack.c.bf16 %v242_v50, %v240_v49 }
  0x8b   :  { %565 = vmatprep.subr.bf16.mxu0 %v564_v21  ;;  %v245_v53 = vld [vmem:[#allocation8 + $0x68] sm:$0xff]  ;;  %v142_v56 = vld [vmem:[#allocation5 + $0xd8] sm:$0xff]  ;;  %v574_v58 = vpack.c.bf16 %v137_v52, %v135_v47  ;;  %v139_v59 = vld [vmem:[#allocation5 + $0xc0] sm:$0xff] }
  0x8c   :  { %v596_v60 = vpack.c.bf16 %v247_v54, %v245_v53  ;;  %v244_v61 = vld [vmem:[#allocation8 + $0x60] sm:$0xff]  ;;  %v246_v62 = vld [vmem:[#allocation8 + $0x70] sm:$0xff]  ;;  %v576_v63 = vpack.c.bf16 %v142_v56, %v140_v55  ;;  %v249_v1 = vld [vmem:[#allocation8 + $0x88] sm:$0xff] }
  0x8d   :  { %591 = vmatpush1.bf16.msra.mxu1 %v590_v45  ;;  %v141_v0 = vld [vmem:[#allocation5 + $0xd0] sm:$0xff]  ;;  %v251_v2 = vld [vmem:[#allocation8 + $0x98] sm:$0xff]  ;;  %v144_v3 = vld [vmem:[#allocation5 + $0xe8] sm:$0xff]  ;;  %v598_v5 = vpack.c.bf16 %v246_v62, %v244_v61 }
  0x8e   :  { %567 = vmatpush1.bf16.msra.mxu0 %v566_v31  ;;  %593 = vmatprep.subr.bf16.mxu1 %v592_v48  ;;  %v146_v4 = vld [vmem:[#allocation5 + $0xf8] sm:$0xff]  ;;  %v578_v6 = vpack.c.bf16 %v141_v0, %v139_v59  ;;  %v143_v7 = vld [vmem:[#allocation5 + $0xe0] sm:$0xff]  ;;  %v600_v8 = vpack.c.bf16 %v251_v2, %v249_v1  ;;  %v145_v12 = vld [vmem:[#allocation5 + $0xf0] sm:$0xff] }
  0x8f   :  { %569 = vmatprep.subr.bf16.mxu0 %v568_v36  ;;  %v248_v9 = vld [vmem:[#allocation8 + $0x80] sm:$0xff]  ;;  %v250_v10 = vld [vmem:[#allocation8 + $0x90] sm:$0xff]  ;;  %v580_v11 = vpack.c.bf16 %v146_v4, %v144_v3  ;;  %v253_v13 = vld [vmem:[#allocation8 + $0xa8] sm:$0xff]  ;;  %v582_v16 = vpack.c.bf16 %v145_v12, %v143_v7 }
  0x90   :  { %v255_v14 = vld [vmem:[#allocation8 + $0xb8] sm:$0xff]  ;;  %v602_v15 = vpack.c.bf16 %v250_v10, %v248_v9  ;;  %v252_v18 = vld [vmem:[#allocation8 + $0xa0] sm:$0xff]  ;;  %v254_v19 = vld [vmem:[#allocation8 + $0xb0] sm:$0xff] }
  0x91   :  { %595 = vmatpush1.bf16.msra.mxu1 %v594_v57  ;;  %v604_v17 = vpack.c.bf16 %v255_v14, %v253_v13  ;;  %v257_v20 = vld [vmem:[#allocation8 + $0xc8] sm:$0xff]  ;;  %v259_v21 = vld [vmem:[#allocation8 + $0xd8] sm:$0xff]  ;;  %v606_v22 = vpack.c.bf16 %v254_v19, %v252_v18  ;;  %v256_v25 = vld [vmem:[#allocation8 + $0xc0] sm:$0xff] }
  0x92   :  { %571 = vmatpush1.bf16.msra.mxu0 %v570_v46  ;;  %597 = vmatprep.subr.bf16.mxu1 %v596_v60  ;;  %v114_v23 = vld [vmem:[#allocation2] sm:$0xff]  ;;  %v608_v24 = vpack.c.bf16 %v259_v21, %v257_v20  ;;  %v261_v27 = vld [vmem:[#allocation8 + $0xe8] sm:$0xff]  ;;  %v260_v31 = vld [vmem:[#allocation8 + $0xe0] sm:$0xff] }
  0x93   :  { %573 = vmatprep.subr.bf16.mxu0 %v572_v51  ;;  %v258_v26 = vld [vmem:[#allocation8 + $0xd0] sm:$0xff]  ;;  %v263_v28 = vld [vmem:[#allocation8 + $0xf8] sm:$0xff]  ;;  %v265_v33 = vld [vmem:[#allocation8 + $0x108] sm:$0xff] }
  0x94   :  { %v610_v29 = vpack.c.bf16 %v258_v26, %v256_v25  ;;  %v612_v30 = vpack.c.bf16 %v263_v28, %v261_v27  ;;  %v262_v32 = vld [vmem:[#allocation8 + $0xf0] sm:$0xff]  ;;  %v267_v34 = vld [vmem:[#allocation8 + $0x118] sm:$0xff]  ;;  %v264_v37 = vld [vmem:[#allocation8 + $0x100] sm:$0xff] }
  0x95   :  { %599 = vmatpush1.bf16.msra.mxu1 %v598_v5  ;;  %v614_v35 = vpack.c.bf16 %v262_v32, %v260_v31  ;;  %v616_v36 = vpack.c.bf16 %v267_v34, %v265_v33  ;;  %v266_v38 = vld [vmem:[#allocation8 + $0x110] sm:$0xff]  ;;  %v269_v39 = vld [vmem:[#allocation8 + $0x128] sm:$0xff]  ;;  %v271_v40 = vld [vmem:[#allocation8 + $0x138] sm:$0xff] }
  0x96   :  { %575 = vmatpush1.bf16.msra.mxu0 %v574_v58  ;;  %601 = vmatprep.subr.bf16.mxu1 %v600_v8  ;;  %v618_v41 = vpack.c.bf16 %v266_v38, %v264_v37  ;;  %v620_v42 = vpack.c.bf16 %v271_v40, %v269_v39  ;;  %v268_v43 = vld [vmem:[#allocation8 + $0x120] sm:$0xff]  ;;  %v270_v44 = vld [vmem:[#allocation8 + $0x130] sm:$0xff]  ;;  %v273_v45 = vld [vmem:[#allocation8 + $0x148] sm:$0xff] }
  0x97   :  { %577 = vmatprep.subr.bf16.mxu0 %v576_v63  ;;  %v275_v46 = vld [vmem:[#allocation8 + $0x158] sm:$0xff]  ;;  %v622_v47 = vpack.c.bf16 %v270_v44, %v268_v43  ;;  %v272_v49 = vld [vmem:[#allocation8 + $0x140] sm:$0xff]  ;;  %v274_v50 = vld [vmem:[#allocation8 + $0x150] sm:$0xff] }
  0x98   :  { %v624_v48 = vpack.c.bf16 %v275_v46, %v273_v45  ;;  %v277_v51 = vld [vmem:[#allocation8 + $0x168] sm:$0xff]  ;;  %v279_v52 = vld [vmem:[#allocation8 + $0x178] sm:$0xff]  ;;  %v626_v53 = vpack.c.bf16 %v274_v50, %v272_v49  ;;  %v276_v55 = vld [vmem:[#allocation8 + $0x160] sm:$0xff] }
  0x99   :  { %603 = vmatpush1.bf16.msra.mxu1 %v602_v15  ;;  %v628_v54 = vpack.c.bf16 %v279_v52, %v277_v51  ;;  %v278_v56 = vld [vmem:[#allocation8 + $0x170] sm:$0xff]  ;;  %v281_v57 = vld [vmem:[#allocation8 + $0x188] sm:$0xff]  ;;  %v283_v58 = vld [vmem:[#allocation8 + $0x198] sm:$0xff] }
  0x9a   :  { %579 = vmatpush1.bf16.msra.mxu0 %v578_v6  ;;  %605 = vmatprep.subr.bf16.mxu1 %v604_v17  ;;  %v630_v59 = vpack.c.bf16 %v278_v56, %v276_v55  ;;  %v632_v60 = vpack.c.bf16 %v283_v58, %v281_v57  ;;  %v280_v61 = vld [vmem:[#allocation8 + $0x180] sm:$0xff]  ;;  %v282_v62 = vld [vmem:[#allocation8 + $0x190] sm:$0xff]  ;;  %v285_v63 = vld [vmem:[#allocation8 + $0x1a8] sm:$0xff]  ;;  %v149_v57 = vlaneseq }
  0x9b   :  { %581 = vmatprep.subr.bf16.mxu0 %v580_v11  ;;  %v287_v0 = vld [vmem:[#allocation8 + $0x1b8] sm:$0xff]  ;;  %v634_v1 = vpack.c.bf16 %v282_v62, %v280_v61  ;;  %v284_v3 = vld [vmem:[#allocation8 + $0x1a0] sm:$0xff]  ;;  %v286_v4 = vld [vmem:[#allocation8 + $0x1b0] sm:$0xff] }
  0x9c   :  { %v636_v2 = vpack.c.bf16 %v287_v0, %v285_v63  ;;  %v289_v5 = vld [vmem:[#allocation8 + $0x1c8] sm:$0xff]  ;;  %v291_v6 = vld [vmem:[#allocation8 + $0x1d8] sm:$0xff]  ;;  %v638_v7 = vpack.c.bf16 %v286_v4, %v284_v3  ;;  %v288_v9 = vld [vmem:[#allocation8 + $0x1c0] sm:$0xff]  ;;  %v150_v58 = vshrl.u32 %v149_v57, 7 }
  0x9d   :  { %607 = vmatpush1.bf16.msra.mxu1 %v606_v22  ;;  %v640_v8 = vpack.c.bf16 %v291_v6, %v289_v5  ;;  %v290_v10 = vld [vmem:[#allocation8 + $0x1d0] sm:$0xff]  ;;  %v293_v12 = vld [vmem:[#allocation8 + $0x1e8] sm:$0xff]  ;;  %v295_v13 = vld [vmem:[#allocation8 + $0x1f8] sm:$0xff] }
  0x9e   :  { %583 = vmatpush1.bf16.msra.mxu0 %v582_v16  ;;  %609 = vmatprep.subr.bf16.mxu1 %v608_v24  ;;  %v642_v11 = vpack.c.bf16 %v290_v10, %v288_v9  ;;  %v644_v14 = vpack.c.bf16 %v295_v13, %v293_v12  ;;  %v292_v15 = vld [vmem:[#allocation8 + $0x1e0] sm:$0xff]  ;;  %v294_v16 = vld [vmem:[#allocation8 + $0x1f0] sm:$0xff]  ;;  %v155_v61 = vsub.s32 1, %v150_v58 }
  0x9f   :  { %v646_v17 = vpack.c.bf16 %v294_v16, %v292_v15  ;;  %v397_v18 = vld [vmem:[#allocation11 + $0x80] sm:$0xff]  ;;  %v398_v19 = vld [vmem:[#allocation11 + $0x88] sm:$0xff]  ;;  %v400_v24 = vld [vmem:[#allocation11 + $0x98] sm:$0xff] }
  0xa0   :  { %v381_v20 = vld [vmem:[#allocation11] sm:$0xff]  ;;  %v648_v21 = vpack.c.bf16 %v398_v19, %v397_v18  ;;  %v382_v22 = vld [vmem:[#allocation11 + $0x8] sm:$0xff]  ;;  %v383_v27 = vld [vmem:[#allocation11 + $0x10] sm:$0xff] }
  0xa1   :  { %224 = vmatmul.mubr.f32.vlgmr.msra.gmra.mrb[0].mxu0 %v114_v23  ;;  %611 = vmatpush1.bf16.msra.mxu1 %v610_v29  ;;  %v399_v23 = vld [vmem:[#allocation11 + $0x90] sm:$0xff]  ;;  %v650_v25 = vpack.c.bf16 %v382_v22, %v381_v20  ;;  %v384_v28 = vld [vmem:[#allocation11 + $0x18] sm:$0xff]  ;;  %v401_v29 = vld [vmem:[#allocation11 + $0xa0] sm:$0xff] }
  0xa2   :  { %613 = vmatprep.subr.bf16.mxu1 %v612_v30  ;;  %v652_v26 = vpack.c.bf16 %v400_v24, %v399_v23  ;;  %649 = vmatprep.subr.bf16.mxu0 %v648_v21  ;;  %v402_v30 = vld [vmem:[#allocation11 + $0xa8] sm:$0xff]  ;;  %v654_v31 = vpack.c.bf16 %v384_v28, %v383_v27  ;;  %v385_v33 = vld [vmem:[#allocation11 + $0x20] sm:$0xff]  ;;  %v387_v39 = vld [vmem:[#allocation11 + $0x30] sm:$0xff] }
  0xa3   :  { %651 = vmatpush3.bf16.msra.mxu0 %v650_v25  ;;  %v656_v32 = vpack.c.bf16 %v402_v30, %v401_v29  ;;  %v386_v34 = vld [vmem:[#allocation11 + $0x28] sm:$0xff]  ;;  %v388_v40 = vld [vmem:[#allocation11 + $0x38] sm:$0xff]  ;;  %v389_v45 = vld [vmem:[#allocation11 + $0x40] sm:$0xff] }
  0xa4   :  { %653 = vmatprep.subr.bf16.mxu0 %v652_v26  ;;  %v658_v37 = vpack.c.bf16 %v386_v34, %v385_v33  ;;  %v662_v43 = vpack.c.bf16 %v388_v40, %v387_v39  ;;  %v390_v46 = vld [vmem:[#allocation11 + $0x48] sm:$0xff]  ;;  %v391_v51 = vld [vmem:[#allocation11 + $0x50] sm:$0xff]  ;;  %v392_v52 = vld [vmem:[#allocation11 + $0x58] sm:$0xff] }
  0xa5   :  { %615 = vmatpush1.bf16.msra.mxu1 %v614_v35  ;;  %v403_v35 = vld [vmem:[#allocation11 + $0xb0] sm:$0xff]  ;;  %v666_v49 = vpack.c.bf16 %v390_v46, %v389_v45  ;;  %v670_v55 = vpack.c.bf16 %v392_v52, %v391_v51  ;;  %v393_v6 = vld [vmem:[#allocation11 + $0x60] sm:$0xff]  ;;  %v412_v10 = vld [vmem:[#allocation11 + $0xf8] sm:$0xff] }
  0xa6   :  { %617 = vmatprep.subr.bf16.mxu1 %v616_v36  ;;  %v404_v36 = vld [vmem:[#allocation11 + $0xb8] sm:$0xff]  ;;  %v411_v9 = vld [vmem:[#allocation11 + $0xf0] sm:$0xff]  ;;  %v515_v25 = vld [vmem:[#allocation13] ss:$0 sm:$0xff] }
  0xa7   :  { %655 = vmatpush3.bf16.msra.mxu0 %v654_v31  ;;  %v660_v38 = vpack.c.bf16 %v404_v36, %v403_v35  ;;  %v395_v12 = vld [vmem:[#allocation11 + $0x70] sm:$0xff]  ;;  %v396_v13 = vld [vmem:[#allocation11 + $0x78] sm:$0xff] }
  0xa8   :  { %657 = vmatprep.subr.bf16.mxu0 %v656_v32  ;;  %v296_v15 = vld [vmem:[#allocation10] sm:$0x3] }
  0xa9   :  { %619 = vmatpush1.bf16.msra.mxu1 %v618_v41  ;;  %v405_v41 = vld [vmem:[#allocation11 + $0xc0] sm:$0xff] }
  0xaa   :  { %621 = vmatprep.subr.bf16.mxu1 %v620_v42  ;;  %v406_v42 = vld [vmem:[#allocation11 + $0xc8] sm:$0xff] }
  0xab   :  { %659 = vmatpush3.bf16.msra.mxu0 %v658_v37  ;;  %v664_v44 = vpack.c.bf16 %v406_v42, %v405_v41 }
  0xac   :  { %661 = vmatprep.subr.bf16.mxu0 %v660_v38 }
  0xad   :  { %623 = vmatpush1.bf16.msra.mxu1 %v622_v47  ;;  %v407_v47 = vld [vmem:[#allocation11 + $0xd0] sm:$0xff] }
  0xae   :  { %625 = vmatprep.subr.bf16.mxu1 %v624_v48  ;;  %v408_v48 = vld [vmem:[#allocation11 + $0xd8] sm:$0xff] }
  0xaf   :  { %663 = vmatpush3.bf16.msra.mxu0 %v662_v43  ;;  %v668_v50 = vpack.c.bf16 %v408_v48, %v407_v47 }
  0xb0   :  { %665 = vmatprep.subr.bf16.mxu0 %v664_v44 }
  0xb1   :  { %627 = vmatpush1.bf16.msra.mxu1 %v626_v53  ;;  %v409_v53 = vld [vmem:[#allocation11 + $0xe0] sm:$0xff] }
  0xb2   :  { %629 = vmatprep.subr.bf16.mxu1 %v628_v54  ;;  %v410_v54 = vld [vmem:[#allocation11 + $0xe8] sm:$0xff] }
  0xb3   :  { %667 = vmatpush3.bf16.msra.mxu0 %v666_v49  ;;  %v672_v56 = vpack.c.bf16 %v410_v54, %v409_v53 }
  0xb4   :  { %669 = vmatprep.subr.bf16.mxu0 %v668_v50 }
  0xb5   :  { %631 = vmatpush1.bf16.msra.mxu1 %v630_v59  ;;  %v151_v59 = vsub.s32 0, %v150_v58 }
  0xb6   :  { %633 = vmatprep.subr.bf16.mxu1 %v632_v60  ;;  %v147_v60 = vld [vmem:[#allocation7] sm:$0x3] }
  0xb7   :  { %671 = vmatpush3.bf16.msra.mxu0 %v670_v55  ;;  %v152_v62 = vrot.slane %v147_v60, %v151_v59  ;;  %v156_v63 = vrot.slane %v147_v60, %v155_v61  ;;  %v301_v16 = vrot.slane %v296_v15, %v151_v59 }
  0xb8   :  { %673 = vmatprep.subr.bf16.mxu0 %v672_v56 }
  0xb9   :  { %635 = vmatpush1.bf16.msra.mxu1 %v634_v1 }
  0xba   :  { %637 = vmatprep.subr.bf16.mxu1 %v636_v2 }
  0xbd   :  { %639 = vmatpush1.bf16.msra.mxu1 %v638_v7  ;;  %v394_v7 = vld [vmem:[#allocation11 + $0x68] sm:$0xff] }
  0xbe   :  { %641 = vmatprep.subr.bf16.mxu1 %v640_v8  ;;  %v674_v8 = vpack.c.bf16 %v394_v7, %v393_v6 }
  0xc0   :  { %675 = vmatpush3.bf16.msra.mxu0 %v674_v8 }
  0xc1   :  { %643 = vmatpush1.bf16.msra.mxu1 %v642_v11  ;;  %v676_v11 = vpack.c.bf16 %v412_v10, %v411_v9 }
  0xc2   :  { %645 = vmatprep.subr.bf16.mxu1 %v644_v14  ;;  %v678_v14 = vpack.c.bf16 %v396_v13, %v395_v12 }
  0xc3   :  { %677 = vmatprep.subr.bf16.mxu0 %v676_v11 }
  0xc4   :  { %679 = vmatpush3.bf16.msra.mxu0 %v678_v14 }
  0xc5   :  { %647 = vmatpush1.bf16.msra.mxu1 %v646_v17  ;;  %v305_v17 = vrot.slane %v296_v15, %v155_v61 }
 0x174   :  { %v225_v0 = vpop.f32.mrb[0].mxu0 }
 0x175   :  { %v226_v1 = vadd.f32 %v225_v0, %v152_v62  ;;  %v227_v2 = vpop.f32.mrb[1].mxu0 }
 0x176   :  { %v228_v3 = vadd.f32 %v227_v2, %v156_v63 }
 0x177   :  { %v230_v5 = vmax.f32 %v226_v1, 0.0 }
 0x178   :  { %v231_v4 = vmax.f32 %v228_v3, 0.0 }
 0x17a   :  { %372 = vmatprep.mubr.f32.mxu1 %v231_v4 }
 0x17b   :  { %373 = vmatmul.mubr.f32.vlgmr.msra.gmra.mrb[0].mxu1 %v230_v5 }
 0x24e   :  { %v374_v18 = vpop.f32.mrb[0].mxu1 }
 0x24f   :  { %v375_v19 = vadd.f32 %v374_v18, %v301_v16  ;;  %v376_v20 = vpop.f32.mrb[1].mxu1 }
 0x250   :  { %v377_v21 = vadd.f32 %v376_v20, %v305_v17 }
 0x251   :  { %v379_v23 = vmax.f32 %v375_v19, 0.0 }
 0x252   :  { %v380_v22 = vmax.f32 %v377_v21, 0.0 }
 0x254   :  { %484 = vmatprep.mubr.f32.mxu0 %v380_v22 }
 0x255   :  { %485 = vmatmul.mubr.f32.vlgmr.msra.gmra.mrb[2].mxu0 %v379_v23 }
 0x328   :  { %v549_v24 = vpop.f32.mrb[2].mxu0 }
 0x329   :  { %v550_v26 = vpop.f32.mrb[3].mxu0 }
 0x32a   :  { %v551_v27 = vadd.f32 %v550_v26, %v549_v24 }
 0x32c   :  { %v487_v28 = vadd.f32 %v551_v27, %v515_v25 }
 0x32e   :  { %v516_v29 = vmul.f32 -1.442695, %v487_v28 }
 0x330   :  { %693 = vpow2.f32 %v516_v29 }
 0x33a   :  { %v694_v30 = vpop.eup %693 }
 0x33b   :  { %v493_v31 = vadd.f32 1.0, %v694_v30 }
 0x33d   :  { %695 = vrcp.f32 %v493_v31 }
 0x347   :  { %v696_v32 = vpop.eup %695 }
 0x348   :  { %496 = vst [vmem:[#allocation14] sm:$0xff] %v696_v32 }
 0x349   :  { %862 = shalt.err (!%p859_p4)
}
 0x34a   :  { %s863_s11 = scalar_lea.hbm %s1039_s7, 128 }
 0x34b   :  { %p864_p5 = scmp.ne.s32.totalorder %s1039_s7, %s863_s11  ;;  %p867_p6 = scmp.lt.u32.totalorder %s863_s11, %s1039_s7 }
 0x34d   :  { %p869_p7 = pnand %p867_p6, %p864_p5 }
 0x34f   :  { %872 = shalt.err (!%p869_p7)
}
 0x350   :  { %506 = dma.vmem_to_hbm [thread:$0]  %s504_s13, 128, %s1039_s7, [#allocation4]  }
 0x351   :  { %881 = dma.done.wait [#allocation4], 128  }
 0x352   :  { %882 = vsyncadd [#allocation4], 4294967168 }
 0x353   :  { %510 = vsyncpa [#allocation3], 1 }
 0x354   :  { %511 = vsyncpa [#allocation6], 1 }
 0x355   :  { %512 = vsyncpa [#allocation9], 1 }
 0x356   :  { %513 = vsyncpa [#allocation12], 1 }
 0x357   :  { %514 = vsyncpa [#allocation4], 1 }

</bundles_post_ra>
